<compile_context>
chip_gen: v7x
topology: tpu7x:2x2x1
jax: 0.10.0
libtpu: 0.0.40
codegen_flags: <defaults>
</compile_context>

<pallas_src>
import jax
import jax.numpy as jnp
from jax import lax
from jax.experimental import pallas as pl
from jax.experimental.pallas import tpu as pltpu


def _pos_emb_kernel(win_ref, o_ref):
    # win_ref : VMEM (seq_tile, emb)       pipelined window of the table
    # o_ref   : VMEM (seq_tile, bsz*emb)   lane-dense output block
    seq_tile, emb = win_ref.shape
    bsz = o_ref.shape[1] // emb

    # Batch broadcast = bsz contiguous 2-D copies of the window rows into the
    # lane-dense output block.  When emb % 128 == 0 every copy starts at a
    # 128-aligned lane offset -> unmasked vector stores.  win_ref is re-read
    # inside the loop (instead of hoisting one giant live value) so very large
    # tiles don't force register spills: VMEM re-loads are cheap (3 vld slots)
    # while spill-stores compete with the single vst slot.
    # TODO(synk): for emb % 128 != 0, replicate along the sublane axis
    # ((seq*bsz, emb) output layout / stride-0 pl.ds broadcast reads) to avoid
    # masked stores + lane rotates; on v5e route the fan-out through
    # VMEM->VMEM async copies to keep the single vector-store slot free.
    for b in range(bsz):
        o_ref[:, b * emb:(b + 1) * emb] = win_ref[...]


def _round_up(x, m):
    return ((x + m - 1) // m) * m


def _pick_seq_tile(seq_len, out_row_bytes, itemsize,
                   target_tile_bytes=4 << 20, max_rows=2048):
    """Rows per grid step.

    Returns either seq_len (single full-extent block, legal for any seq_len)
    or a multiple of the dtype's sublane granule, sized so the output tile is
    around `target_tile_bytes` (amortizes the ~0.35 us per-step overhead while
    staying well inside scoped VMEM when double-buffered).
    """
    granule = 8 * max(1, 4 // max(int(itemsize), 1))   # 8 f32 / 16 bf16 / 32 i8
    cap = max(granule, min(max_rows, target_tile_bytes // max(out_row_bytes, 1)))
    seq_tile = max(granule, (cap // granule) * granule)

    if seq_tile >= seq_len:
        # Whole sequence fits in one target-sized tile.
        if seq_len >= 2 * granule:
            # Split into >=2 steps so ("parallel",) can shard the grid across
            # v7x's two TensorCores; negligible cost on single-TC v5e/v6e.
            half = -(-seq_len // 2)
            seq_tile = _round_up(half, granule)
        else:
            return seq_len                      # single full-extent block
    if -(-seq_len // seq_tile) <= 1:
        return seq_len
    return seq_tile


def learned_positional_embedding(inputs, weights, offset=0):
    """inputs:  (seq_len, bsz) int array (only its shape matters).
       weights: (init_size, embedding_dim) float array (embedding table).
       returns: (seq_len, bsz, embedding_dim) = weights[offset+arange(seq_len)]
                broadcast over bsz (token values are ignored, as in the spec).
    """
    seq_len, bsz = inputs.shape
    init_size, emb = weights.shape

    if isinstance(offset, int):
        if not (0 <= offset and offset + seq_len <= init_size):
            raise ValueError(
                f"offset ({offset}) + seq_len ({seq_len}) exceeds embedding "
                f"table size ({init_size})")
    # Traced offsets: lax.dynamic_slice clamps out-of-range starts instead of
    # faulting (the PyTorch module would raise); in-range offsets are exact.

    itemsize = jnp.dtype(weights.dtype).itemsize
    out_row_bytes = bsz * emb * itemsize
    seq_tile = _pick_seq_tile(seq_len, out_row_bytes, itemsize)
    grid = (pl.cdiv(seq_len, seq_tile),)

    # Slice only the needed window; Pallas then pipelines its HBM->VMEM
    # fetches (double-buffered) against the output writeback.
    window = lax.dynamic_slice(
        weights, (jnp.asarray(offset, dtype=jnp.int32), jnp.int32(0)),
        (seq_len, emb))

    out_tile_bytes = seq_tile * bsz * emb * itemsize
    win_tile_bytes = seq_tile * emb * itemsize
    # 2x (double-buffered) input window + 2x output tile + compiler headroom.
    vmem_limit = int(min(64 << 20,
                         max(32 << 20,
                             2 * (out_tile_bytes + win_tile_bytes) + (4 << 20))))

    out2d = pl.pallas_call(
        _pos_emb_kernel,
        out_shape=jax.ShapeDtypeStruct((seq_len, bsz * emb), weights.dtype),
        grid=grid,
        in_specs=[
            pl.BlockSpec((seq_tile, emb), lambda si: (si, 0)),
        ],
        out_specs=pl.BlockSpec((seq_tile, bsz * emb), lambda si: (si, 0)),
        compiler_params=pltpu.CompilerParams(
            dimension_semantics=("parallel",),        # megacore on v7x
            vmem_limit_bytes=vmem_limit,
        ),
        cost_estimate=pl.CostEstimate(
            flops=0, transcendentals=0,
            bytes_accessed=(1 + bsz) * seq_len * emb * itemsize),
    )(window)

    # Free row-major metadata reshape back to the module's layout.
    return out2d.reshape(seq_len, bsz, emb)


if __name__ == "__main__":
    key = jax.random.PRNGKey(0)
    k_w, k_in = jax.random.split(key)

    embedding_dim = 32
    init_size = 405
    seq_len, bsz = 8, 2
    offset = 3

    # nn.init.normal_(weight, std=0.02)
    weights = (0.02 * jax.random.normal(k_w, (init_size, embedding_dim))
               ).astype(jnp.float32)
    # inputs only provide the (seq_len, bsz) shape
    inputs = jax.random.randint(k_in, (seq_len, bsz), 0, 100, dtype=jnp.int32)

    out = learned_positional_embedding(inputs, weights, offset=offset)
    out = jax.block_until_ready(out)

    # reference check in plain JAX
    positions = offset + jnp.arange(seq_len)
    ref = jnp.broadcast_to(weights[positions][:, None, :],
                           (seq_len, bsz, embedding_dim))
    assert out.shape == (seq_len, bsz, embedding_dim)
    assert jnp.allclose(out, ref), "mismatch vs reference"

    print("KERNEL_OK")
</pallas_src>

<mosaic_0001>
module attributes {stable_mosaic.version = 11 : i64} {
  func.func @_pos_emb_kernel(%arg0: i32, %arg1: memref<8x32xf32, #tpu.memory_space<vmem>>, %arg2: memref<8x64xf32, #tpu.memory_space<vmem>>) attributes {dimension_semantics = [#tpu.dimension_semantics<parallel>], iteration_bounds = array<i64: 1>, scalar_prefetch = 0 : i64, scratch_operands = 0 : i64, tpu.core_type = #tpu.core_type<tc>, window_params = [{transform_indices = @transform_0, window_bounds = array<i64: 8, 32>}, {transform_indices = @transform_1, window_bounds = array<i64: 8, 64>}]} {
    %c0 = arith.constant 0 : index
    %c0_0 = arith.constant 0 : index
    %0 = vector.load %arg1[%c0, %c0_0] : memref<8x32xf32, #tpu.memory_space<vmem>>, vector<8x32xf32>
    %c0_1 = arith.constant 0 : index
    %c0_2 = arith.constant 0 : index
    %1 = vector.load %arg2[%c0_1, %c0_2] : memref<8x64xf32, #tpu.memory_space<vmem>>, vector<8x32xf32>
    tpu.vector_store %arg2[%c0_1, %c0_2], %0 {strides = array<i32>} : memref<8x64xf32, #tpu.memory_space<vmem>>, vector<8x32xf32>,
    %c0_3 = arith.constant 0 : index
    %c0_4 = arith.constant 0 : index
    %2 = vector.load %arg1[%c0_3, %c0_4] : memref<8x32xf32, #tpu.memory_space<vmem>>, vector<8x32xf32>
    %c0_5 = arith.constant 0 : index
    %c32 = arith.constant 32 : index
    %3 = vector.load %arg2[%c0_5, %c32] : memref<8x64xf32, #tpu.memory_space<vmem>>, vector<8x32xf32>
    tpu.vector_store %arg2[%c0_5, %c32], %2 {strides = array<i32>} : memref<8x64xf32, #tpu.memory_space<vmem>>, vector<8x32xf32>,
    return
  }
  func.func @transform_0(%arg0: i32) -> (i32, i32) {
    %c0_i32 = arith.constant 0 : i32
    %c0_i32_0 = arith.constant 0 : i32
    return %arg0, %c0_i32 : i32, i32
  }
  func.func @transform_1(%arg0: i32) -> (i32, i32) {
    %c0_i32 = arith.constant 0 : i32
    %c0_i32_0 = arith.constant 0 : i32
    return %arg0, %c0_i32 : i32, i32
  }
}

</mosaic_0001>

<bundles_post_ra>
// kernel: tpu_custom_call.1
= control target key start
LH: loop header
LB: loop body
LE: loop exit
PB: predicated region body
PF: predicated region fallthrough
CT: control target
= control target key end

     0   :  { %6 = vsyncpa [#allocation3], 0  ;;  %s134_s0 = inlined_call_operand.hbm [shape: f32[8,32], index: 0, kind: input, shape index: {}]   ;;  %s135_s1 = inlined_call_operand.hbm [shape: f32[8,64], index: 1, kind: output, shape index: {}]  }
   0x1   :  { %7 = vsyncpa [#allocation4], 0  ;;  %s97_s6 = smov [#allocation2]   ;;  %s49_s10 = scalar_lea.hbm %s134_s0, 128 }
   0x2   :  { %s14_s7 = sshll.u32 %s97_s6, 4  ;;  %p50_p0 = scmp.ne.s32.totalorder %s134_s0, %s49_s10  ;;  %s15_s7 = int_to_ptr.vmem [resolvable:$true] %s14_s7 }
   0x3   :  { %p53_p1 = scmp.lt.u32.totalorder %s49_s10, %s134_s0 }
   0x5   :  { %p55_p2 = pnand %p53_p1, %p50_p0 }
   0x7   :  { %58 = shalt.err (!%p55_p2)
}
   0x8   :  { %s59_s15 = scalar_lea.vmem %s15_s7, 128  ;;  %p64_p4 = scmp.lt.s32.totalorder %s15_s7, %s15_s7 }
   0x9   :  { %p60_p3 = scmp.ne.s32.totalorder %s15_s7, %s59_s15  ;;  %p65_p5 = scmp.lt.s32.totalorder %s59_s15, %s59_s15 }
   0xb   :  { %p66_p6 = por %p65_p5, %p64_p4 }
   0xd   :  { %p67_p7 = pnand %p66_p6, %p60_p3 }
   0xf   :  { %70 = shalt.err (!%p67_p7)
}
  0x10   :  { %17 = dma.hbm_to_vmem [thread:$0]  %s134_s0, 128, %s15_s7, [#allocation3]  }
  0x11   :  { %93 = dma.done.wait [#allocation3], 128  }
  0x12   :  { %94 = vsyncadd [#allocation3], 4294967168  ;;  %vm22_vm0 = vcmask 261120   ;;  %v24_v0 = vld [vmem:[#allocation2] sm:$0xff]  ;;  %s98_s18 = smov 32   ;;  %s99_s19 = smov [#allocation5]  }
  0x13   :  { %26 = vrot.lane.b32.xlu0 %v24_v0, %s98_s18  ;;  %23 = vst.msk [vmem:[#allocation5] sm:$0xff] %vm22_vm0, %v24_v0  ;;  %s37_s20 = sshll.u32 %s99_s19, 4  ;;  %vm29_vm1 = vcmask 523520   ;;  %s38_s20 = int_to_ptr.vmem [resolvable:$true] %s37_s20 }
  0x14   :  { %s71_s21 = scalar_lea.vmem %s38_s20, 128  ;;  %p76_p9 = scmp.lt.s32.totalorder %s38_s20, %s38_s20 }
  0x15   :  { %p72_p8 = scmp.ne.s32.totalorder %s38_s20, %s71_s21  ;;  %p77_p10 = scmp.lt.s32.totalorder %s71_s21, %s71_s21 }
  0x17   :  { %p78_p11 = por %p77_p10, %p76_p9 }
  0x19   :  { %p79_p12 = pnand %p78_p11, %p72_p8 }
  0x85   :  { %v27_v1 = vpop.permute.xlu0 %26 }
  0x86   :  { %30 = vst.msk [vmem:[#allocation5] sm:$0xff] %vm29_vm1, %v27_v1 }
  0x87   :  { %82 = shalt.err (!%p79_p12)
}
  0x88   :  { %s83_s23 = scalar_lea.hbm %s135_s1, 128 }
  0x89   :  { %p84_p13 = scmp.ne.s32.totalorder %s135_s1, %s83_s23  ;;  %p87_p0 = scmp.lt.u32.totalorder %s83_s23, %s135_s1 }
  0x8b   :  { %p89_p1 = pnand %p87_p0, %p84_p13 }
  0x8d   :  { %92 = shalt.err (!%p89_p1)
}
  0x8e   :  { %40 = dma.vmem_to_hbm [thread:$0]  %s38_s20, 128, %s135_s1, [#allocation4]  }
  0x8f   :  { %95 = dma.done.wait [#allocation4], 128  }
  0x90   :  { %96 = vsyncadd [#allocation4], 4294967168 }
  0x91   :  { %44 = vsyncpa [#allocation3], 1 }
  0x92   :  { %45 = vsyncpa [#allocation4], 1 }

</bundles_post_ra>
